<compile_context>
chip_gen: v6e
topology: v6e:2x2x1
jax: 0.10.0
libtpu: 0.0.40
codegen_flags: <defaults>
</compile_context>

<pallas_src>
import jax
import jax.numpy as jnp
from jax.experimental import pallas as pl
from jax.experimental.pallas import tpu as pltpu

_LANES = 128                        # vreg lane width (v5e/v6e/v7x)
_TARGET_TILE_BYTES = 2 * 1024 * 1024   # ~2 MiB input tile -> near-roofline streaming
_MIN_GRID_STEPS = 4                 # keep both v7x TCs fed / pipeline alive
_SMALL_INPUT_BYTES = 2 * 1024 * 1024   # below this, fused XLA op wins outright


def _sublane(dtype) -> int:
    """Second-to-last-dim tile granularity for a packed dtype."""
    itemsize = jnp.dtype(dtype).itemsize
    return {4: 8, 2: 16, 1: 32}.get(itemsize, 8)


def _abs_scale_kernel(a_ref, x_ref, o_ref):
    # a_ref: (1,) f32 parameter in SMEM
    # x_ref / o_ref: (block_rows, 128) lane-dense tile in VMEM
    x = x_ref[...]
    a = a_ref[0]
    if jnp.issubdtype(x_ref.dtype, jnp.floating):
        # Compute in the input dtype: abs is a sign-bit clear, no upcast needed.
        o_ref[...] = (jnp.abs(x) * a.astype(x_ref.dtype)).astype(o_ref.dtype)
    else:
        # TODO(synk): integer inputs keep x.dtype output (PyTorch would promote).
        o_ref[...] = (jnp.abs(x).astype(jnp.float32) * a).astype(o_ref.dtype)


def abs_model_forward(
    x: jax.Array,
    a,
    *,
    min_pallas_bytes: int = _SMALL_INPUT_BYTES,
    donate_x: bool = False,
) -> jax.Array:
    """y = a * |x|, elementwise.  Pallas streaming kernel for large inputs."""
    orig_shape = x.shape
    orig_dtype = x.dtype
    n = x.size
    itemsize = jnp.dtype(orig_dtype).itemsize

    # Small-input fast path: pure launch/prologue overhead territory.
    if n * itemsize < min_pallas_bytes:
        if jnp.issubdtype(orig_dtype, jnp.floating):
            return (jnp.abs(x) * jnp.asarray(a, dtype=orig_dtype)).astype(orig_dtype)
        return (jnp.abs(x).astype(jnp.float32) * jnp.asarray(a, jnp.float32)).astype(orig_dtype)

    a_arr = jnp.asarray(a, dtype=jnp.float32).reshape((1,))
    sub = _sublane(orig_dtype)

    rows = pl.cdiv(n, _LANES)
    lane_pad = rows * _LANES - n        # only nonzero when n % 128 != 0

    # ~2 MiB tiles, dtype-aware sublane rounding, but keep >= _MIN_GRID_STEPS steps.
    max_block_rows = max(sub, (_TARGET_TILE_BYTES // (_LANES * itemsize)) // sub * sub)
    fair_rows = pl.cdiv(pl.cdiv(rows, _MIN_GRID_STEPS), sub) * sub
    block_rows = max(sub, min(max_block_rows, fair_rows))

    grid = (pl.cdiv(rows, block_rows),)   # partial last block handled by Pallas

    flat = x.reshape(-1)
    if lane_pad:
        # Minimal pad only for a ragged lane tail (keeps the (rows,128) reshape valid).
        flat = jnp.pad(flat, (0, lane_pad))
    x2d = flat.reshape(rows, _LANES)

    extra_kwargs = {}
    if donate_x:
        # In-place update when the caller donates X (same shape & dtype).
        extra_kwargs["input_output_aliases"] = {1: 0}

    out2d = pl.pallas_call(
        _abs_scale_kernel,
        out_shape=jax.ShapeDtypeStruct((rows, _LANES), orig_dtype),
        grid=grid,
        in_specs=[
            pl.BlockSpec(memory_space=pltpu.SMEM),                 # scalar a
            pl.BlockSpec((block_rows, _LANES), lambda i: (i, 0)),  # X tile
        ],
        out_specs=pl.BlockSpec((block_rows, _LANES), lambda i: (i, 0)),
        compiler_params=pltpu.CompilerParams(
            dimension_semantics=("parallel",),     # shard grid across v7x TCs
            vmem_limit_bytes=32 * 1024 * 1024,     # multi-MiB tiles legal on v5e too
        ),
        **extra_kwargs,
    )(a_arr, x2d)

    out = out2d.reshape(-1)
    if lane_pad:
        out = out[:n]
    return out.reshape(orig_shape)


if __name__ == "__main__":
    key = jax.random.PRNGKey(0)
    # Small NCHW input consistent with an image-like tensor
    x = jax.random.normal(key, (2, 4, 16, 16), dtype=jnp.float32)

    # Deterministic parameter init: nn.Parameter(torch.tensor(1.0))
    a = jnp.float32(1.0)

    ref = a * jnp.abs(x)

    # Force the Pallas path (the example is tiny and would hit the fast path).
    y_pallas = abs_model_forward(x, a, min_pallas_bytes=0)
    y_pallas = jax.block_until_ready(y_pallas)
    assert y_pallas.shape == x.shape and y_pallas.dtype == x.dtype
    assert jnp.allclose(y_pallas, ref, atol=0.0, rtol=0.0)

    # Default dispatch (small-input fast path) must match as well.
    y_fast = jax.block_until_ready(abs_model_forward(x, a))
    assert jnp.allclose(y_fast, ref, atol=0.0, rtol=0.0)

    print("KERNEL_OK")
</pallas_src>

<mosaic_0001>
module attributes {stable_mosaic.version = 11 : i64} {
  func.func @_abs_scale_kernel(%arg0: i32, %arg1: memref<1xf32, #tpu.memory_space<smem>>, %arg2: memref<8x128xf32, #tpu.memory_space<vmem>>, %arg3: memref<8x128xf32, #tpu.memory_space<vmem>>) attributes {dimension_semantics = [#tpu.dimension_semantics<parallel>], iteration_bounds = array<i64: 2>, scalar_prefetch = 0 : i64, scratch_operands = 0 : i64, tpu.core_type = #tpu.core_type<tc>, window_params = [{transform_indices = @transform_0, window_bounds = array<i64: 1>}, {transform_indices = @transform_1, window_bounds = array<i64: 8, 128>}, {transform_indices = @transform_2, window_bounds = array<i64: 8, 128>}]} {
    %c0 = arith.constant 0 : index
    %c0_0 = arith.constant 0 : index
    %0 = vector.load %arg2[%c0, %c0_0] : memref<8x128xf32, #tpu.memory_space<vmem>>, vector<8x128xf32>
    %c0_1 = arith.constant 0 : index
    %1 = memref.load %arg1[%c0_1] : memref<1xf32, #tpu.memory_space<smem>>
    %2 = math.absf %0 : vector<8x128xf32>
    %3 = vector.broadcast %1 : f32 to vector<8x128xf32>
    %4 = arith.mulf %2, %3 : vector<8x128xf32>
    %c0_2 = arith.constant 0 : index
    %c0_3 = arith.constant 0 : index
    %5 = vector.load %arg3[%c0_2, %c0_3] : memref<8x128xf32, #tpu.memory_space<vmem>>, vector<8x128xf32>
    tpu.vector_store %arg3[%c0_2, %c0_3], %4 {strides = array<i32>} : memref<8x128xf32, #tpu.memory_space<vmem>>, vector<8x128xf32>,
    return
  }
  func.func @transform_0(%arg0: i32) -> i32 {
    %c0_i32 = arith.constant 0 : i32
    %c0_i32_0 = arith.constant 0 : i32
    return %c0_i32 : i32
  }
  func.func @transform_1(%arg0: i32) -> (i32, i32) {
    %c0_i32 = arith.constant 0 : i32
    %c0_i32_0 = arith.constant 0 : i32
    return %arg0, %c0_i32 : i32, i32
  }
  func.func @transform_2(%arg0: i32) -> (i32, i32) {
    %c0_i32 = arith.constant 0 : i32
    %c0_i32_0 = arith.constant 0 : i32
    return %arg0, %c0_i32 : i32, i32
  }
}

</mosaic_0001>

<bundles_post_ra>
// kernel: tpu_custom_call.1
= control target key start
LH: loop header
LB: loop body
LE: loop exit
PB: predicated region body
PF: predicated region fallthrough
CT: control target
= control target key end

     0   :  { %s563_s0 = inlined_call_operand.<no memory space> [shape: f32[1], index: 0, kind: input, shape index: {}]   ;;  %s564_s1 = inlined_call_operand.hbm [shape: f32[16,128], index: 1, kind: input, shape index: {}]   ;;  %s565_s2 = inlined_call_operand.hbm [shape: f32[16,128], index: 2, kind: output, shape index: {}]  }
   0x1   :  { %7 = sst [smem:[#allocation2]] %s563_s0 }
   0x2   :  { %8 = vsyncpa [#allocation4], 0 }
   0x3   :  { %10 = vsyncpa [#allocation4 + $0x1], 0 }
   0x4   :  { %11 = vsyncpa [#allocation5], 0 }
   0x5   :  { %13 = vsyncpa [#allocation5 + $0x1], 0  ;;  %s422_s11 = smov 0   ;;  %s424_s12 = smov 0  }
   0x6   :  { %s426_s13 = smov 0   ;;  %s428_s14 = smov 0  }
   0x7 LB: > { %s443_s0 = sadd.s32 4294967295, %s400_s14   ;;  %s250_s15 = sadd.s32 4294967294, %s400_s14   ;;  %s400_s14 = sphi %s428_s14, %s582_s14   ;;  %s396_s13 = sphi %s426_s13, %s581_s13   ;;  %s392_s12 = sphi %s424_s12, %s580_s12   ;;  %s388_s11 = sphi %s422_s11, %s579_s11  }
   0x8   : > { %s447_s16 = sadd.s32 1, %s400_s14   ;;  %s47_s17 = sadd.s32 1, %s396_s13 }
   0x9   : > { %s44_s18 = ssub.s32 %s400_s14, %s447_s16  ;;  %p54_p0 = scmp.ne.s32.totalorder %s396_s13, %s392_s12 }
   0xa   : > { %p45_p1 = scmp.eq.s32.totalorder %s44_s18, 0  ;;  %p55_p2 = scmp.eq.s32.totalorder %s400_s14, 0 }
   0xb   : > { %p60_p3 = scmp.ne.s32.totalorder %s392_s12, %s388_s11  ;;  %p61_p4 = scmp.eq.s32.totalorder %s443_s0, 0 }
   0xc   : > { %s459_s19 = scalar_select %p45_p1, %s396_s13, %s47_s17  }
   0xd   : > { %p461_p5 = por %p55_p2, %p54_p0  ;;  %p465_p6 = por %p61_p4, %p60_p3 }
   0xe   : > { %p84_p7 = scmp.eq.s32.totalorder %s443_s0, 1  ;;  %p90_p8 = scmp.eq.s32.totalorder %s250_s15, 1 }
   0xf   : > { %s569_s21 = scalar_select %p465_p6, 1, 0 }
  0x10   : > { %p274_p10 = scmp.lt.s32.totalorder %s400_s14, 2  ;;  %p472_p11 = por %p84_p7, %p54_p0 }
  0x11   : > { %p476_p12 = por %p90_p8, %p60_p3  ;;  %s113_s24 = sand.u32 1, %s396_s13  }
  0x12   : > { %s570_s22 = scalar_select %p472_p11, 1, 0 }
  0x13   : > { %s571_s23 = scalar_select %p476_p12, 1, 0 }
  0x14   : > { %s254_s25 = sshll.u32 %s400_s14, 7  ;;  %s253_s26 = sshll.u32 %s113_s24, 3 }
  0x15   : > { %s485_s29 = scalar_lea.hbm %s564_s1, %s254_s25  ;;  %s117_s30 = scalar_lea.vmem [#allocation3], %s253_s26 }
  0x16   : > { %s124_s3 = sshll.u32 %s117_s30, 4  ;;  %p489_p13 = pnand %p274_p10, %p461_p5  ;;  %s493_s3 = int_to_ptr.vmem [resolvable:$true] %s124_s3 }
  0x17   : > { %s114_s5 = scalar_lea.sflag [#allocation4], %s113_s24  ;;  %s308_s6 = scalar_lea.hbm %s485_s29, 128 }
  0x18   : > { %p309_p2 = scmp.ne.s32.totalorder %s485_s29, %s308_s6  ;;  %p310_p3 = pneg %p489_p13 }
  0x19   : > { %s313_s9 = scalar_lea.hbm %s564_s1, 256  ;;  %p314_p5 = scmp.lt.s32.totalorder %s485_s29, %s564_s1 }
  0x1a   : > { %p311_p4 = pnand %p310_p3, %p309_p2  ;;  %p315_p8 = scmp.lt.s32.totalorder %s313_s9, %s308_s6 }
  0x1c   : > { %p312_p7 = pneg %p311_p4  ;;  %p316_p10 = por %p315_p8, %p314_p5 }
  0x1e   : > { %p317_p9 = pnand %p316_p10, %p312_p7 }
  0x20   : > { %320 = shalt.err (!%p317_p9)
}
  0x21   : > { %s321_s17 = scalar_lea.vmem %s493_s3, 128  ;;  %s402_s18 = smov [#allocation3]  }
  0x22   : > { %p322_p0 = scmp.ne.s32.totalorder %s493_s3, %s321_s17  ;;  %s326_s20 = sshll.u32 %s402_s18, 4  ;;  %s327_s20 = int_to_ptr.vmem [resolvable:$false] %s326_s20 }
  0x23   : > { %s328_s24 = scalar_lea.vmem %s327_s20, 256  ;;  %p329_p4 = scmp.lt.s32.totalorder %s493_s3, %s327_s20 }
  0x24   : > { %p324_p1 = pnand %p322_p0, %p310_p3  ;;  %p330_p12 = scmp.lt.s32.totalorder %s328_s24, %s321_s17 }
  0x26   : > { %p325_p2 = pneg %p324_p1  ;;  %p331_p11 = por %p330_p12, %p329_p4 }
  0x28   : > { %p332_p6 = pnand %p331_p11, %p325_p2 }
  0x2a   : > { %335 = shalt.err (!%p332_p6)
}
  0x2b   : > { %269 = dma.hbm_to_vmem [thread:$0]  (!%p489_p13), %s485_s29, 128, %s493_s3, %s114_s5  }
  0x2c   : > { %p573_p9 = scmp.lt.s32.totalorder %s400_s14, 3  ;;  %p574_p7 = scmp.ge.s32.totalorder %s400_s14, 1 }
  0x2e   : > { %p130_p0 = pnand %p574_p7, %p573_p9 }
  0x2f   : > { %s520_s25 = sand.u32 (!%p130_p0), 1, %s392_s12   ;;  %p575_p6 = scmp.ne.s32.totalorder (!%p130_p0), %s569_s21, 0 }
  0x30   : > { %133 = sbr.rel (%p130_p0) target bundleno = 79 (0x4f), region = 28  ;;  %s256_s26 = sshll.u32 (!%p130_p0), %s520_s25, 3 }
  0x31   : > { %s136_s27 = scalar_lea.sflag (!%p130_p0), [#allocation4], %s520_s25  ;;  %s139_s28 = scalar_lea.vmem (!%p130_p0), [#allocation3], %s256_s26 }
  0x35   : > { %379 = dma.done.wait (%p575_p6), %s136_s27, 128  }
  0x36   : > { %381 = vsyncadd (%p575_p6), %s136_s27, 4294967168  ;;  %s161_s29 = sld [smem:[#allocation2]]  ;;  %v160_v0 = vld [vmem:[%s139_s28] sm:$0xff]  ;;  %s159_s30 = scalar_lea.vmem [#allocation6], %s256_s26 }
  0x37   : > { %s180_s3 = sshll.u32 %s159_s30, 4  ;;  %s259_s4 = sshll.u32 %s443_s0, 7  ;;  %v162_v2 = vand.u32 2147483647, %v160_v0  ;;  %s181_s3 = int_to_ptr.vmem [resolvable:$true] %s180_s3 }
  0x38   : > { %s178_s7 = scalar_lea.hbm %s565_s2, %s259_s4  ;;  %s167_s8 = scalar_lea.sflag [#allocation5], %s520_s25 }
  0x39   : > { %s336_s21 = scalar_lea.vmem %s181_s3, 128  ;;  %p576_p12 = scmp.ne.s32.totalorder %s570_s22, 0 }
  0x3a   : > { %p337_p11 = scmp.ne.s32.totalorder %s181_s3, %s336_s21  ;;  %s403_s9 = smov [#allocation6]  }
  0x3b   : > { %s340_s10 = sshll.u32 %s403_s9, 4  ;;  %s341_s10 = int_to_ptr.vmem [resolvable:$false] %s340_s10 }
  0x3c   : > { %v163_v1 = vstv %s161_s29  ;;  %p338_p13 = pnand %p337_p11, %p576_p12  ;;  %s342_s15 = scalar_lea.vmem %s341_s10, 256 }
  0x3d   : > { %v164_v3 = vmul.f32 %v163_v1, %v162_v2  ;;  %p343_p3 = scmp.lt.s32.totalorder %s181_s3, %s341_s10  ;;  %p344_p5 = scmp.lt.s32.totalorder %s342_s15, %s336_s21 }
  0x3e   : > { %p339_p1 = pneg %p338_p13 }
  0x3f   : > { %165 = vst [vmem:[%s159_s30] sm:$0xff] %v164_v3  ;;  %p345_p8 = por %p344_p5, %p343_p3 }
  0x41   : > { %p346_p10 = pnand %p345_p8, %p339_p1 }
  0x43   : > { %349 = shalt.err (!%p346_p10)
}
  0x44   : > { %s350_s0 = scalar_lea.hbm %s178_s7, 128  ;;  %s354_s20 = scalar_lea.hbm %s565_s2, 256 }
  0x45   : > { %p351_p2 = scmp.ne.s32.totalorder %s178_s7, %s350_s0  ;;  %p355_p7 = scmp.lt.s32.totalorder %s178_s7, %s565_s2 }
  0x46   : > { %p356_p0 = scmp.lt.s32.totalorder %s354_s20, %s350_s0 }
  0x47   : > { %p352_p4 = pnand %p351_p2, %p576_p12 }
  0x48   : > { %p357_p6 = por %p356_p0, %p355_p7 }
  0x49   : > { %p353_p9 = pneg %p352_p4 }
  0x4b   : > { %p358_p11 = pnand %p357_p6, %p353_p9 }
  0x4d   : > { %361 = shalt.err (!%p358_p11)
}
  0x4e   : > { %264 = dma.vmem_to_hbm [thread:$0]  (%p576_p12), %s181_s3, 128, %s178_s7, %s167_s8  }
  0x4f PF: > { %s192_s26 = sand.u32 1, %s388_s11   ;;  %p577_p13 = scmp.ne.s32.totalorder %s571_s23, 0 }
  0x50   : > { %p578_p1 = scmp.ge.s32.totalorder %s400_s14, 2  ;;  %s193_s27 = scalar_lea.sflag [#allocation5], %s192_s26 }
  0x52   : > { %p271_p3 = pnand %p578_p1, %p577_p13 }
  0x54   : > { %p272_p5 = pneg %p271_p3 }
  0x56   : > { %383 = dma.done.wait (%p272_p5), %s193_s27, 128  }
  0x57   : > { %385 = vsyncadd (%p272_p5), %s193_s27, 4294967168  ;;  %p16_p8 = scmp.ge.s32.totalorder %s447_s16, 4   ;;  %s579_s11 = smov %s392_s12 }
  0x58   : > { %s580_s12 = smov %s396_s13  ;;  %s581_s13 = smov %s459_s19 }
  0x59   : > { %s582_s14 = smov %s447_s16  ;;  %18 = sbr.rel (!%p16_p8) target bundleno = 7 (0x7), region = 73 }
  0x5e   :  { %198 = vsyncpa [#allocation4], 1 }
  0x5f   :  { %200 = vsyncpa [#allocation4 + $0x1], 1 }
  0x60   :  { %201 = vsyncpa [#allocation5], 1 }
  0x61   :  { %203 = vsyncpa [#allocation5 + $0x1], 1 }

</bundles_post_ra>
